<compile_context>
chip_gen: v5e
topology: v5e:2x2
jax: 0.10.0
libtpu: 0.0.40
codegen_flags: <defaults>
</compile_context>

<pallas_src>
import functools

import jax
import jax.numpy as jnp
from jax import lax
from jax.experimental import pallas as pl
from jax.experimental.pallas import tpu as pltpu


def _pick_tile(total, cap, quantum):
    """Largest tile <= cap that evenly divides `total` (full extent if it fits)."""
    if total <= cap:
        return total
    t = (cap // quantum) * quantum
    while t >= quantum:
        if total % t == 0:
            return t
        t -= quantum
    return total  # fall back to a single block


# ----------------------------------------------------------------------------
# Pallas kernels
# ----------------------------------------------------------------------------
def _encoder_kernel(x_ref, w1_ref, b1_ref, w2_ref, b2_ref, emb_ref, q_ref):
    """One (M-tile, K-tile) grid step of the 2-layer MLP encoder.

    The emb output block is resident across the contraction axis (its index_map
    is constant in k), so it doubles as the f32 accumulator: at kk==0 it is
    initialized with the broadcast bias (bias folded into the init), each step
    accumulates x@W1, and the last step applies ReLU, the second (small) matmul
    and a fused L2-normalization epilogue.
    """
    kk = pl.program_id(1)

    @pl.when(kk == 0)
    def _():
        emb_ref[...] = jnp.broadcast_to(b1_ref[...], emb_ref.shape)

    emb_ref[...] += jnp.dot(x_ref[...], w1_ref[...],
                            preferred_element_type=jnp.float32)

    @pl.when(kk == pl.num_programs(1) - 1)
    def _():
        h = jnp.maximum(emb_ref[...], 0.0)            # ReLU (f32)
        emb_ref[...] = h
        q = jnp.dot(h.astype(jnp.bfloat16), w2_ref[...],
                    preferred_element_type=jnp.float32) + b2_ref[...]
        # Fused L2 norm epilogue == F.normalize(q, dim=1) with eps=1e-12.
        ssq = jnp.sum(q * q, axis=1, keepdims=True)
        q_ref[...] = q * lax.rsqrt(jnp.maximum(ssq, 1e-24))


def _momentum_kernel(m, pq_ref, pk_ref, o_ref, o_bf16_ref):
    # param_k = param_k * m + param_q * (1 - m); f32 output aliased onto pk,
    # plus the bf16 shadow the key-encoder pass consumes (no separate cast pass).
    new_k = pk_ref[...] * m + pq_ref[...] * (1.0 - m)
    o_ref[...] = new_k
    o_bf16_ref[...] = new_k.astype(jnp.bfloat16)


def _pair_loss_kernel(inv_t, q_ref, k_ref, queue_ref, sum_ref):
    """MoCo cross-entropy for one M tile of (q, k) pair rows.

    The queue lives fully resident in VMEM (constant index_map, loaded once).
    q rows and queue columns are L2-normalized, so every logit is <= 1/T; we
    use inv_t as a FIXED logsumexp max (no cross-lane max, no running rescale).
    Per-row CE is reduced to a single scalar accumulated in the resident (1,1)
    output block across M tiles (lane-dense store problem avoided entirely).
    """
    i = pl.program_id(0)

    @pl.when(i == 0)
    def _():
        sum_ref[...] = jnp.zeros_like(sum_ref)

    q = q_ref[...]                                               # (tm, c) f32
    l_pos = jnp.sum(q * k_ref[...], axis=1, keepdims=True) * inv_t   # (tm, 1)
    l_neg = jnp.dot(q.astype(jnp.bfloat16), queue_ref[...],
                    preferred_element_type=jnp.float32) * inv_t  # (tm, K)
    # fixed-max logsumexp: exponents are all <= 0 by construction
    s = jnp.exp(l_pos - inv_t) + jnp.sum(jnp.exp(l_neg - inv_t),
                                         axis=1, keepdims=True)
    ce = inv_t + jnp.log(s) - l_pos                              # (tm, 1)
    sum_ref[...] += jnp.sum(ce, keepdims=True)                   # (1, 1)


# ----------------------------------------------------------------------------
# Wrappers around pallas_call
# ----------------------------------------------------------------------------
def encoder_forward(x_bf16, w1_bf16, b1, w2_bf16, b2):
    """x_bf16: [M, D_in] bf16 -> (embedding [M, hidden] f32, q [M, dim] f32 L2-normed)."""
    m_rows, d_in = x_bf16.shape
    hidden = w1_bf16.shape[1]
    dim = w2_bf16.shape[1]

    # NOTE(v7x): with tiny m_rows there is a single M block, so only one
    # TensorCore gets work; irrelevant at this scale, revisit for large M.
    tm = _pick_tile(m_rows, 256, 16)
    tk = _pick_tile(d_in, 2048, 128)
    grid = (m_rows // tm, d_in // tk)

    emb, q = pl.pallas_call(
        _encoder_kernel,
        out_shape=(jax.ShapeDtypeStruct((m_rows, hidden), jnp.float32),
                   jax.ShapeDtypeStruct((m_rows, dim), jnp.float32)),
        grid_spec=pltpu.PrefetchScalarGridSpec(
            num_scalar_prefetch=0,
            grid=grid,
            in_specs=[
                pl.BlockSpec((tm, tk), lambda i, k: (i, k)),       # x
                pl.BlockSpec((tk, hidden), lambda i, k: (k, 0)),   # W1 (streamed over k)
                pl.BlockSpec((1, hidden), lambda i, k: (0, 0)),    # b1
                pl.BlockSpec((hidden, dim), lambda i, k: (0, 0)),  # W2 (resident)
                pl.BlockSpec((1, dim), lambda i, k: (0, 0)),       # b2
            ],
            out_specs=(pl.BlockSpec((tm, hidden), lambda i, k: (i, 0)),  # emb = acc
                       pl.BlockSpec((tm, dim), lambda i, k: (i, 0)))),
        compiler_params=pltpu.CompilerParams(
            dimension_semantics=("parallel", "arbitrary")),
    )(x_bf16, w1_bf16,
      b1.reshape(1, -1).astype(jnp.float32),
      w2_bf16,
      b2.reshape(1, -1).astype(jnp.float32))
    return emb, q


def _momentum_2d(pq, pk, m):
    """param_k <- param_k*m + param_q*(1-m) for a 2-D weight; also emits the
    bf16 shadow copy the key encoder consumes. f32 output aliased onto pk."""
    rows, cols = pq.shape
    tr = _pick_tile(rows, 1024, 8)       # memory-bound: biggest tile that fits
    new_pk, new_pk_bf16 = pl.pallas_call(
        functools.partial(_momentum_kernel, m),
        out_shape=(jax.ShapeDtypeStruct((rows, cols), jnp.float32),
                   jax.ShapeDtypeStruct((rows, cols), jnp.bfloat16)),
        grid_spec=pltpu.PrefetchScalarGridSpec(
            num_scalar_prefetch=0,
            grid=(rows // tr,),
            in_specs=[pl.BlockSpec((tr, cols), lambda i: (i, 0)),
                      pl.BlockSpec((tr, cols), lambda i: (i, 0))],
            out_specs=(pl.BlockSpec((tr, cols), lambda i: (i, 0)),
                       pl.BlockSpec((tr, cols), lambda i: (i, 0)))),
        input_output_aliases={1: 0},   # update param_k in place
        compiler_params=pltpu.CompilerParams(
            dimension_semantics=("parallel",)),
    )(pq, pk)
    return new_pk, new_pk_bf16


def momentum_update(params_q, params_k, m):
    """Returns (new params_k [w1,b1,w2,b2], bf16 shadows (w1_bf16, w2_bf16))."""
    w1q, b1q, w2q, b2q = params_q
    w1k, b1k, w2k, b2k = params_k
    w1k_new, w1k_bf = _momentum_2d(w1q, w1k, m)
    w2k_new, w2k_bf = _momentum_2d(w2q, w2k, m)
    # tiny 1-D biases stay in plain JAX (and stay f32 inside the encoder kernel)
    b1k_new = b1k * m + b1q * (1.0 - m)
    b2k_new = b2k * m + b2q * (1.0 - m)
    return [w1k_new, b1k_new, w2k_new, b2k_new], (w1k_bf, w2k_bf)


def moco_loss_all_pairs(all_q, all_k, queue, temperature):
    """Single pallas_call for every (i, j != i) pair, stacked along the row axis.

    loss_torch = (1/P) * sum_pairs mean_N(CE) == mean over all P*N rows of CE;
    the kernel accumulates the row-sum, the final divide happens here.
    """
    v = len(all_q)
    pairs_q, pairs_k = [], []
    for i in range(v):
        for j in range(v):
            if i == j:
                continue
            pairs_q.append(all_q[i])
            pairs_k.append(all_k[j])
    q = jnp.concatenate(pairs_q, axis=0)          # [P*N, C] f32
    k = jnp.concatenate(pairs_k, axis=0)          # [P*N, C] f32
    m_rows, c = q.shape
    kq_total = queue.shape[1]

    tm = _pick_tile(m_rows, 512, 8)
    grid = (m_rows // tm,)

    # VMEM budget: resident bf16 queue + double-buffered q/k tiles + l_neg temp.
    queue_bytes = c * kq_total * 2
    vmem_est = queue_bytes + 4 * (tm * c * 4) + tm * kq_total * 4 + (1 << 20)
    cp_kwargs = {"dimension_semantics": ("arbitrary",)}
    if vmem_est > (24 << 20):
        cp_kwargs["vmem_limit_bytes"] = int(min(vmem_est + (8 << 20), 100 << 20))

    ce_sum = pl.pallas_call(
        functools.partial(_pair_loss_kernel, 1.0 / temperature),
        out_shape=jax.ShapeDtypeStruct((1, 1), jnp.float32),
        grid_spec=pltpu.PrefetchScalarGridSpec(
            num_scalar_prefetch=0,
            grid=grid,
            in_specs=[
                pl.BlockSpec((tm, c), lambda i: (i, 0)),            # q
                pl.BlockSpec((tm, c), lambda i: (i, 0)),            # k
                pl.BlockSpec((c, kq_total), lambda i: (0, 0)),      # queue (resident)
            ],
            out_specs=pl.BlockSpec((1, 1), lambda i: (0, 0))),      # scalar accumulator
        compiler_params=pltpu.CompilerParams(**cp_kwargs),
    )(q, k, queue.astype(jnp.bfloat16))
    return ce_sum[0, 0] / m_rows


# ----------------------------------------------------------------------------
# MoCo module (training forward)
# ----------------------------------------------------------------------------
class MoCoPallas:
    def __init__(self, key, in_features, hidden, dim=128, K=1024, m=0.999, T=0.07):
        self.K, self.m, self.T, self.dim = K, m, T, dim
        k1, k2, k3 = jax.random.split(key, 3)
        # query encoder parameters (deterministic synthetic init)
        w1 = jax.random.normal(k1, (in_features, hidden), jnp.float32) * 0.02
        b1 = jnp.zeros((hidden,), jnp.float32)
        w2 = jax.random.normal(k2, (hidden, dim), jnp.float32) * 0.02
        b2 = jnp.zeros((dim,), jnp.float32)
        self.params_q = [w1, b1, w2, b2]
        # bf16 shadow weights for the query encoder (cast once, not per call)
        self.params_q_bf16 = (w1.astype(jnp.bfloat16), w2.astype(jnp.bfloat16))
        # key encoder starts as an exact copy (param_k.data.copy_(param_q.data))
        self.params_k = [p.copy() for p in self.params_q]
        self.params_k_bf16 = tuple(p for p in self.params_q_bf16)
        # queue buffer: randn(dim, K) then normalize along dim=0
        queue = jax.random.normal(k3, (dim, K), jnp.float32)
        queue = queue / jnp.maximum(
            jnp.sqrt(jnp.sum(queue * queue, axis=0, keepdims=True)), 1e-12)
        self.queue = queue
        self.queue_ptr = 0

    def _dequeue_and_enqueue(self, keys):
        batch = keys.shape[0]
        assert self.K % batch == 0
        self.queue = jax.lax.dynamic_update_slice(
            self.queue, keys.T, (0, self.queue_ptr))
        self.queue_ptr = (self.queue_ptr + batch) % self.K

    def forward_train(self, lr):
        # lr: [N, V, C, H, W] float32
        n, v = lr.shape[0], lr.shape[1]
        # Batch all views into one encoder pass: rows i*n:(i+1)*n == view i.
        x = jnp.transpose(lr, (1, 0, 2, 3, 4)).reshape(v * n, -1)
        x_bf16 = x.astype(jnp.bfloat16)          # cast ONCE, shared by q & k passes

        # one batched q-encoder pass (L2 norm fused into the kernel)
        w1q_bf, w2q_bf = self.params_q_bf16
        emb_q, q_all = encoder_forward(x_bf16, w1q_bf, self.params_q[1],
                                       w2q_bf, self.params_q[3])
        embedding = emb_q[:n]                    # == encoder_q(lr[:, 0])[0]
        all_q = [q_all[i * n:(i + 1) * n] for i in range(v)]

        # momentum update of key encoder (no grad); also emits bf16 shadows
        self.params_k, self.params_k_bf16 = momentum_update(
            self.params_q, self.params_k, self.m)

        # one batched k-encoder pass using the freshly blended bf16 weights
        w1k_bf, w2k_bf = self.params_k_bf16
        _, k_all = encoder_forward(x_bf16, w1k_bf, self.params_k[1],
                                   w2k_bf, self.params_k[3])
        all_k = [k_all[i * n:(i + 1) * n] for i in range(v)]

        # all V*(V-1) contrastive pairs in a single gridded loss kernel;
        # result equals torch's (sum of per-pair CE means) / (V*(V-1)).
        loss = moco_loss_all_pairs(all_q, all_k, self.queue, self.T)

        self._dequeue_and_enqueue(all_k[0])
        return embedding, loss


# ----------------------------------------------------------------------------
if __name__ == "__main__":
    key = jax.random.PRNGKey(0)
    k_param, k_data = jax.random.split(key)

    # small shapes: batch=2, views=2, channels=4, spatial=16x16
    # lane-dense feature dims (multiples of 128)
    N, V, C, H, W = 2, 2, 4, 16, 16
    HIDDEN, DIM, K = 128, 128, 1024

    moco = MoCoPallas(k_param, in_features=C * H * W, hidden=HIDDEN,
                      dim=DIM, K=K, m=0.999, T=0.07)

    lr = jax.random.normal(k_data, (N, V, C, H, W), jnp.float32)

    embedding, loss = moco.forward_train(lr)
    jax.block_until_ready((embedding, loss))

    assert embedding.shape == (N, HIDDEN)
    assert loss.shape == ()
    assert bool(jnp.isfinite(loss))
    print("KERNEL_OK")
</pallas_src>

<mosaic_0001>
module attributes {stable_mosaic.version = 11 : i64} {
  func.func @_encoder_kernel(%arg0: i32, %arg1: i32, %arg2: memref<4x1024xbf16, #tpu.memory_space<vmem>>, %arg3: memref<1024x128xbf16, #tpu.memory_space<vmem>>, %arg4: memref<1x128xf32, #tpu.memory_space<vmem>>, %arg5: memref<128x128xbf16, #tpu.memory_space<vmem>>, %arg6: memref<1x128xf32, #tpu.memory_space<vmem>>, %arg7: memref<4x128xf32, #tpu.memory_space<vmem>>, %arg8: memref<4x128xf32, #tpu.memory_space<vmem>>) attributes {dimension_semantics = [#tpu.dimension_semantics<parallel>, #tpu.dimension_semantics<arbitrary>], iteration_bounds = array<i64: 1, 1>, scalar_prefetch = 0 : i64, scratch_operands = 0 : i64, tpu.core_type = #tpu.core_type<tc>, window_params = [{transform_indices = @transform_0, window_bounds = array<i64: 4, 1024>}, {transform_indices = @transform_1, window_bounds = array<i64: 1024, 128>}, {pipeline_mode = #tpu.pipeline_mode<synchronous>, transform_indices = @transform_2, window_bounds = array<i64: 1, 128>}, {pipeline_mode = #tpu.pipeline_mode<synchronous>, transform_indices = @transform_3, window_bounds = array<i64: 128, 128>}, {pipeline_mode = #tpu.pipeline_mode<synchronous>, transform_indices = @transform_4, window_bounds = array<i64: 1, 128>}, {transform_indices = @transform_5, window_bounds = array<i64: 4, 128>}, {transform_indices = @transform_6, window_bounds = array<i64: 4, 128>}]} {
    %c0_i32 = arith.constant 0 : i32
    %0 = arith.cmpi eq, %arg1, %c0_i32 : i32
    %1 = arith.extui %0 : i1 to i32
    %c0_i32_0 = arith.constant 0 : i32
    %2 = arith.cmpi ne, %1, %c0_i32_0 : i32
    scf.if %2 {
      %c0_10 = arith.constant 0 : index
      %c0_11 = arith.constant 0 : index
      %12 = vector.load %arg4[%c0_10, %c0_11] : memref<1x128xf32, #tpu.memory_space<vmem>>, vector<1x128xf32>
      %13 = vector.shape_cast %12 : vector<1x128xf32> to vector<1x128xf32>
      %14 = vector.broadcast %13 : vector<1x128xf32> to vector<4x128xf32>
      %c0_12 = arith.constant 0 : index
      %c0_13 = arith.constant 0 : index
      %15 = vector.load %arg7[%c0_12, %c0_13] : memref<4x128xf32, #tpu.memory_space<vmem>>, vector<4x128xf32>
      tpu.vector_store %arg7[%c0_12, %c0_13], %14 {strides = array<i32>} : memref<4x128xf32, #tpu.memory_space<vmem>>, vector<4x128xf32>,
    } else {
    }
    %c0 = arith.constant 0 : index
    %c0_1 = arith.constant 0 : index
    %3 = vector.load %arg7[%c0, %c0_1] : memref<4x128xf32, #tpu.memory_space<vmem>>, vector<4x128xf32>
    %c0_2 = arith.constant 0 : index
    %c0_3 = arith.constant 0 : index
    %4 = vector.load %arg2[%c0_2, %c0_3] : memref<4x1024xbf16, #tpu.memory_space<vmem>>, vector<4x1024xbf16>
    %c0_4 = arith.constant 0 : index
    %c0_5 = arith.constant 0 : index
    %5 = vector.load %arg3[%c0_4, %c0_5] : memref<1024x128xbf16, #tpu.memory_space<vmem>>, vector<1024x128xbf16>
    %cst = arith.constant dense<0.000000e+00> : vector<4x128xf32>
    %6 = tpu.matmul %4, %5, %cst {dimension_numbers = #tpu.dot_dimension_numbers<[1], [0], [0], [1], [0, 0, 1, 1], [], []>} : vector<4x1024xbf16>, vector<1024x128xbf16>, vector<4x128xf32> -> vector<4x128xf32>
    %7 = arith.addf %3, %6 : vector<4x128xf32>
    %c0_6 = arith.constant 0 : index
    %c0_7 = arith.constant 0 : index
    %8 = vector.load %arg7[%c0_6, %c0_7] : memref<4x128xf32, #tpu.memory_space<vmem>>, vector<4x128xf32>
    tpu.vector_store %arg7[%c0_6, %c0_7], %7 {strides = array<i32>} : memref<4x128xf32, #tpu.memory_space<vmem>>, vector<4x128xf32>,
    %c0_i32_8 = arith.constant 0 : i32
    %9 = arith.cmpi eq, %arg1, %c0_i32_8 : i32
    %10 = arith.extui %9 : i1 to i32
    %c0_i32_9 = arith.constant 0 : i32
    %11 = arith.cmpi ne, %10, %c0_i32_9 : i32
    scf.if %11 {
      %c0_10 = arith.constant 0 : index
      %c0_11 = arith.constant 0 : index
      %12 = vector.load %arg7[%c0_10, %c0_11] : memref<4x128xf32, #tpu.memory_space<vmem>>, vector<4x128xf32>
      %cst_12 = arith.constant 0.000000e+00 : f32
      %13 = vector.broadcast %cst_12 : f32 to vector<4x128xf32>
      %14 = arith.maximumf %12, %13 : vector<4x128xf32>
      %c0_13 = arith.constant 0 : index
      %c0_14 = arith.constant 0 : index
      %15 = vector.load %arg7[%c0_13, %c0_14] : memref<4x128xf32, #tpu.memory_space<vmem>>, vector<4x128xf32>
      tpu.vector_store %arg7[%c0_13, %c0_14], %14 {strides = array<i32>} : memref<4x128xf32, #tpu.memory_space<vmem>>, vector<4x128xf32>,
      %16 = arith.truncf %14 : vector<4x128xf32> to vector<4x128xbf16>
      %c0_15 = arith.constant 0 : index
      %c0_16 = arith.constant 0 : index
      %17 = vector.load %arg5[%c0_15, %c0_16] : memref<128x128xbf16, #tpu.memory_space<vmem>>, vector<128x128xbf16>
      %cst_17 = arith.constant dense<0.000000e+00> : vector<4x128xf32>
      %18 = tpu.matmul %16, %17, %cst_17 {dimension_numbers = #tpu.dot_dimension_numbers<[1], [0], [0], [1], [0, 0, 1, 1], [], []>} : vector<4x128xbf16>, vector<128x128xbf16>, vector<4x128xf32> -> vector<4x128xf32>
      %c0_18 = arith.constant 0 : index
      %c0_19 = arith.constant 0 : index
      %19 = vector.load %arg6[%c0_18, %c0_19] : memref<1x128xf32, #tpu.memory_space<vmem>>, vector<1x128xf32>
      %20 = vector.broadcast %19 : vector<1x128xf32> to vector<4x128xf32>
      %21 = arith.addf %18, %20 : vector<4x128xf32>
      %22 = arith.mulf %21, %21 : vector<4x128xf32>
      %cst_20 = arith.constant dense<0.000000e+00> : vector<4xf32>
      %23 = vector.multi_reduction <add>, %22, %cst_20 [1] : vector<4x128xf32> to vector<4xf32>
      %24 = vector.shape_cast %23 : vector<4xf32> to vector<4x1xf32>
      %cst_21 = arith.constant 1.000000e-24 : f32
      %25 = vector.broadcast %cst_21 : f32 to vector<4x1xf32>
      %26 = arith.maximumf %24, %25 : vector<4x1xf32>
      %27 = math.rsqrt %26 : vector<4x1xf32>
      %28 = vector.broadcast %27 : vector<4x1xf32> to vector<4x128xf32>
      %29 = arith.mulf %21, %28 : vector<4x128xf32>
      %c0_22 = arith.constant 0 : index
      %c0_23 = arith.constant 0 : index
      %30 = vector.load %arg8[%c0_22, %c0_23] : memref<4x128xf32, #tpu.memory_space<vmem>>, vector<4x128xf32>
      tpu.vector_store %arg8[%c0_22, %c0_23], %29 {strides = array<i32>} : memref<4x128xf32, #tpu.memory_space<vmem>>, vector<4x128xf32>,
    } else {
    }
    return
  }
  func.func @transform_0(%arg0: i32, %arg1: i32) -> (i32, i32) {
    %c0_i32 = arith.constant 0 : i32
    return %arg0, %arg1 : i32, i32
  }
  func.func @transform_1(%arg0: i32, %arg1: i32) -> (i32, i32) {
    %c0_i32 = arith.constant 0 : i32
    %c0_i32_0 = arith.constant 0 : i32
    return %arg1, %c0_i32 : i32, i32
  }
  func.func @transform_2(%arg0: i32, %arg1: i32) -> (i32, i32) {
    %c0_i32 = arith.constant 0 : i32
    %c0_i32_0 = arith.constant 0 : i32
    %c0_i32_1 = arith.constant 0 : i32
    return %c0_i32, %c0_i32_0 : i32, i32
  }
  func.func @transform_3(%arg0: i32, %arg1: i32) -> (i32, i32) {
    %c0_i32 = arith.constant 0 : i32
    %c0_i32_0 = arith.constant 0 : i32
    %c0_i32_1 = arith.constant 0 : i32
    return %c0_i32, %c0_i32_0 : i32, i32
  }
  func.func @transform_4(%arg0: i32, %arg1: i32) -> (i32, i32) {
    %c0_i32 = arith.constant 0 : i32
    %c0_i32_0 = arith.constant 0 : i32
    %c0_i32_1 = arith.constant 0 : i32
    return %c0_i32, %c0_i32_0 : i32, i32
  }
  func.func @transform_5(%arg0: i32, %arg1: i32) -> (i32, i32) {
    %c0_i32 = arith.constant 0 : i32
    %c0_i32_0 = arith.constant 0 : i32
    return %arg0, %c0_i32 : i32, i32
  }
  func.func @transform_6(%arg0: i32, %arg1: i32) -> (i32, i32) {
    %c0_i32 = arith.constant 0 : i32
    %c0_i32_0 = arith.constant 0 : i32
    return %arg0, %c0_i32 : i32, i32
  }
}

</mosaic_0001>

<bundles_post_ra>
// kernel: tpu_custom_call.1
= control target key start
LH: loop header
LB: loop body
LE: loop exit
PB: predicated region body
PF: predicated region fallthrough
CT: control target
= control target key end

     0   :  { %12 = vsyncpa [#allocation3], 0  ;;  %s1422_s0 = inlined_call_operand.hbm [shape: bf16[4,1024], index: 0, kind: input, shape index: {}]   ;;  %s1423_s1 = inlined_call_operand.hbm [shape: bf16[1024,128], index: 1, kind: input, shape index: {}]   ;;  %s1424_s2 = inlined_call_operand.vmem [shape: f32[1,128], index: 2, kind: input, shape index: {}]   ;;  %s1425_s3 = inlined_call_operand.hbm [shape: bf16[128,128], index: 3, kind: input, shape index: {}]   ;;  %s1426_s4 = inlined_call_operand.vmem [shape: f32[1,128], index: 4, kind: input, shape index: {}]   ;;  %s1427_s5 = inlined_call_operand.hbm [shape: f32[4,128], index: 5, kind: output, shape index: {0}]   ;;  %s1428_s6 = inlined_call_operand.hbm [shape: f32[4,128], index: 6, kind: output, shape index: {1}]  }
   0x1   :  { %13 = vsyncpa [#allocation6], 0 }
   0x2   :  { %14 = vsyncpa [#allocation4], 0  ;;  %s31_s23 = sshll.u32 %s1423_s1, 4  ;;  %s32_s23 = int_to_ptr.hbm [resolvable:$true] %s31_s23 }
   0x3   :  { %15 = vsyncpa [#allocation10], 0  ;;  %s1359_s24 = smov [#allocation5]   ;;  %s21_s28 = sshll.u32 %s1422_s0, 4  ;;  %s22_s28 = int_to_ptr.hbm [resolvable:$true] %s21_s28 }
   0x4   :  { %s33_s25 = sshll.u32 %s1359_s24, 4  ;;  %s1360_s29 = smov 64   ;;  %s34_s25 = int_to_ptr.vmem [resolvable:$true] %s33_s25 }
   0x5   :  { %s1361_s30 = smov 4   ;;  %s1362_s7 = smov [#allocation2]  }
   0x6   :  { %39 = dma.hbm_to_vmem [thread:$0]  %s32_s23, 8192, %s34_s25, [#allocation6], %s1360_s29, %s1360_s29, %s1361_s30  }
   0x7   :  { %s23_s8 = sshll.u32 %s1362_s7, 4  ;;  %s46_s11 = sshll.u32 %s1425_s3, 4  ;;  %s24_s8 = int_to_ptr.vmem [resolvable:$true] %s23_s8  ;;  %s47_s11 = int_to_ptr.hbm [resolvable:$true] %s46_s11 }
   0x8   :  { %26 = dma.hbm_to_vmem [thread:$0]  %s22_s28, 256, %s24_s8, [#allocation3]  }
   0x9   :  { %s1363_s1 = smov [#allocation7]  }
   0xa   :  { %s48_s12 = sshll.u32 %s1363_s1, 4  ;;  %s49_s12 = int_to_ptr.vmem [resolvable:$true] %s48_s12 }
   0xb   :  { %54 = dma.hbm_to_vmem [thread:$0]  %s47_s11, 1024, %s49_s12, [#allocation6], %s1360_s29, %s1360_s29, %s1361_s30  }
   0xc   :  { %1351 = dma.done.wait [#allocation3], 256  }
   0xd   :  { %1352 = vsyncadd [#allocation3], 4294967040 }
   0xe   :  { %1353 = dma.done.wait [#allocation6], 9216  }
   0xf   :  { %1354 = vsyncadd [#allocation6], 4294958080  ;;  %v1155_v0 = vld [vmem:[#allocation5 + $0x38] sm:$0xff]  ;;  %v1154_v4 = vld [vmem:[#allocation5 + $0x30] sm:$0xff]  ;;  %vm809_vm0 = vcmask 1043456   ;;  %s833_s16 = sshll.u32 %s1427_s5, 4  ;;  %s834_s16 = int_to_ptr.hbm [resolvable:$true] %s833_s16 }
  0x10   :  { %v1163_v1 = vld [vmem:[#allocation5 + $0x78] sm:$0xff]  ;;  %614 = vmatpush.bf16.msra.mxu0 %v1155_v0  ;;  %v1162_v5 = vld [vmem:[#allocation5 + $0x70] sm:$0xff]  ;;  %v1153_v8 = vld [vmem:[#allocation5 + $0x28] sm:$0xff]  ;;  %s1364_s17 = smov [#allocation8]   ;;  %s844_s21 = sshll.u32 %s1428_s6, 4  ;;  %s845_s21 = int_to_ptr.hbm [resolvable:$true] %s844_s21 }
  0x11   :  { %v1171_v2 = vld [vmem:[#allocation5 + $0xb8] sm:$0xff]  ;;  %627 = vmatpush.bf16.msra.mxu1 %v1163_v1  ;;  %v1170_v6 = vld [vmem:[#allocation5 + $0xb0] sm:$0xff]  ;;  %v1161_v9 = vld [vmem:[#allocation5 + $0x68] sm:$0xff]  ;;  %s831_s18 = sshll.u32 %s1364_s17, 4  ;;  %s832_s18 = int_to_ptr.vmem [resolvable:$true] %s831_s18 }
  0x12   :  { %v1179_v3 = vld [vmem:[#allocation5 + $0xf8] sm:$0xff]  ;;  %640 = vmatpush.bf16.msra.mxu2 %v1171_v2  ;;  %v1178_v7 = vld [vmem:[#allocation5 + $0xf0] sm:$0xff]  ;;  %v1169_v10 = vld [vmem:[#allocation5 + $0xa8] sm:$0xff] }
  0x13   :  { %653 = vmatpush.bf16.msra.mxu3 %v1179_v3  ;;  %v1177_v11 = vld [vmem:[#allocation5 + $0xe8] sm:$0xff]  ;;  %v1152_v12 = vld [vmem:[#allocation5 + $0x20] sm:$0xff]  ;;  %v79_v16 = vld [vmem:[#allocation2] sm:$0xff] }
  0x14   :  { %615 = vmatpush.bf16.msra.mxu0 %v1154_v4  ;;  %v1160_v13 = vld [vmem:[#allocation5 + $0x60] sm:$0xff]  ;;  %v1151_v17 = vld [vmem:[#allocation5 + $0x18] sm:$0xff]  ;;  %210 = vst [vmem:[#allocation1] ss:$4 sm:$0xff] %v79_v16  ;;  %v1150_v21 = vld [vmem:[#allocation5 + $0x10] sm:$0xff] }
  0x15   :  { %628 = vmatpush.bf16.msra.mxu1 %v1162_v5  ;;  %v1168_v14 = vld [vmem:[#allocation5 + $0xa0] sm:$0xff]  ;;  %v1159_v18 = vld [vmem:[#allocation5 + $0x58] sm:$0xff]  ;;  %v1158_v22 = vld [vmem:[#allocation5 + $0x50] sm:$0xff] }
  0x16   :  { %641 = vmatpush.bf16.msra.mxu2 %v1170_v6  ;;  %v1176_v15 = vld [vmem:[#allocation5 + $0xe0] sm:$0xff]  ;;  %v1167_v19 = vld [vmem:[#allocation5 + $0x98] sm:$0xff]  ;;  %v1166_v23 = vld [vmem:[#allocation5 + $0x90] sm:$0xff] }
  0x17   :  { %654 = vmatpush.bf16.msra.mxu3 %v1178_v7  ;;  %v1175_v20 = vld [vmem:[#allocation5 + $0xd8] sm:$0xff]  ;;  %v1174_v24 = vld [vmem:[#allocation5 + $0xd0] sm:$0xff]  ;;  %v1149_v25 = vld [vmem:[#allocation5 + $0x8] sm:$0xff] }
  0x18   :  { %616 = vmatpush.bf16.msra.mxu0 %v1153_v8  ;;  %v1157_v26 = vld [vmem:[#allocation5 + $0x48] sm:$0xff]  ;;  %v80_v29 = vld [vmem:[#allocation2 + $0x8] sm:$0xff]  ;;  %v1148_v30 = vld [vmem:[#allocation5] sm:$0xff] }
  0x19   :  { %629 = vmatpush.bf16.msra.mxu1 %v1161_v9  ;;  %v1165_v27 = vld [vmem:[#allocation5 + $0x88] sm:$0xff]  ;;  %213 = vst [vmem:[#allocation1 + $0x20] ss:$4 sm:$0xff] %v80_v29  ;;  %v1156_v31 = vld [vmem:[#allocation5 + $0x40] sm:$0xff]  ;;  %v1187_v34 = vld [vmem:[#allocation5 + $0x138] sm:$0xff] }
  0x1a   :  { %642 = vmatpush.bf16.msra.mxu2 %v1169_v10  ;;  %v1173_v28 = vld [vmem:[#allocation5 + $0xc8] sm:$0xff]  ;;  %v1164_v32 = vld [vmem:[#allocation5 + $0x80] sm:$0xff]  ;;  %v1195_v35 = vld [vmem:[#allocation5 + $0x178] sm:$0xff] }
  0x1b   :  { %655 = vmatpush.bf16.msra.mxu3 %v1177_v11  ;;  %v1172_v33 = vld [vmem:[#allocation5 + $0xc0] sm:$0xff]  ;;  %v1203_v36 = vld [vmem:[#allocation5 + $0x1b8] sm:$0xff]  ;;  %v1186_v38 = vld [vmem:[#allocation5 + $0x130] sm:$0xff] }
  0x1c   :  { %617 = vmatpush.bf16.msra.mxu0 %v1152_v12  ;;  %v1211_v37 = vld [vmem:[#allocation5 + $0x1f8] sm:$0xff]  ;;  %v1194_v39 = vld [vmem:[#allocation5 + $0x170] sm:$0xff]  ;;  %v214_v41 = vld.sshfl [vmem:[#allocation1] sm:$0xff pattern:$0x73625140] }
  0x1d   :  { %630 = vmatpush.bf16.msra.mxu1 %v1160_v13  ;;  %v216_v40 = vld.sshfl [vmem:[#allocation1 + $0x10] sm:$0xff pattern:$0x73625140]  ;;  %v217_v42 = vld.sshfl [vmem:[#allocation1 + $0x18] sm:$0xff pattern:$0x73625140] }
  0x1e   :  { %643 = vmatpush.bf16.msra.mxu2 %v1168_v14  ;;  %v215_v43 = vld.sshfl [vmem:[#allocation1 + $0x8] sm:$0xff pattern:$0x73625140]  ;;  %v1185_v46 = vld [vmem:[#allocation5 + $0x128] sm:$0xff]  ;;  %v1184_v50 = vld [vmem:[#allocation5 + $0x120] sm:$0xff] }
  0x1f   :  { %656 = vmatpush.bf16.msra.mxu3 %v1176_v15  ;;  %v1202_v44 = vld [vmem:[#allocation5 + $0x1b0] sm:$0xff]  ;;  %v1193_v47 = vld [vmem:[#allocation5 + $0x168] sm:$0xff]  ;;  %v1192_v51 = vld [vmem:[#allocation5 + $0x160] sm:$0xff] }
  0x20   :  { %618 = vmatpush.bf16.msra.mxu0 %v1151_v17  ;;  %v1210_v45 = vld [vmem:[#allocation5 + $0x1f0] sm:$0xff]  ;;  %v1201_v48 = vld [vmem:[#allocation5 + $0x1a8] sm:$0xff]  ;;  %v1200_v52 = vld [vmem:[#allocation5 + $0x1a0] sm:$0xff] }
  0x21   :  { %631 = vmatpush.bf16.msra.mxu1 %v1159_v18  ;;  %v1209_v49 = vld [vmem:[#allocation5 + $0x1e8] sm:$0xff]  ;;  %v1208_v53 = vld [vmem:[#allocation5 + $0x1e0] sm:$0xff]  ;;  %v1183_v54 = vld [vmem:[#allocation5 + $0x118] sm:$0xff] }
  0x22   :  { %644 = vmatpush.bf16.msra.mxu2 %v1167_v19  ;;  %v1191_v55 = vld [vmem:[#allocation5 + $0x158] sm:$0xff]  ;;  %v1182_v58 = vld [vmem:[#allocation5 + $0x110] sm:$0xff]  ;;  %v1181_v62 = vld [vmem:[#allocation5 + $0x108] sm:$0xff] }
  0x23   :  { %657 = vmatpush.bf16.msra.mxu3 %v1175_v20  ;;  %v1199_v56 = vld [vmem:[#allocation5 + $0x198] sm:$0xff]  ;;  %v1190_v59 = vld [vmem:[#allocation5 + $0x150] sm:$0xff]  ;;  %v1189_v63 = vld [vmem:[#allocation5 + $0x148] sm:$0xff] }
  0x24   :  { %619 = vmatpush.bf16.msra.mxu0 %v1150_v21  ;;  %v1207_v57 = vld [vmem:[#allocation5 + $0x1d8] sm:$0xff]  ;;  %v1198_v60 = vld [vmem:[#allocation5 + $0x190] sm:$0xff]  ;;  %v1197_v0 = vld [vmem:[#allocation5 + $0x188] sm:$0xff] }
  0x25   :  { %632 = vmatpush.bf16.msra.mxu1 %v1158_v22  ;;  %v1206_v61 = vld [vmem:[#allocation5 + $0x1d0] sm:$0xff]  ;;  %v1205_v1 = vld [vmem:[#allocation5 + $0x1c8] sm:$0xff]  ;;  %v1180_v2 = vld [vmem:[#allocation5 + $0x100] sm:$0xff] }
  0x26   :  { %645 = vmatpush.bf16.msra.mxu2 %v1166_v23  ;;  %v1188_v3 = vld [vmem:[#allocation5 + $0x140] sm:$0xff]  ;;  %v218_v6 = vld.sshfl [vmem:[#allocation1 + $0x20] sm:$0xff pattern:$0x73625140]  ;;  %v1219_v10 = vld [vmem:[#allocation7 + $0x38] sm:$0xff] }
  0x27   :  { %658 = vmatpush.bf16.msra.mxu3 %v1174_v24  ;;  %v1196_v4 = vld [vmem:[#allocation5 + $0x180] sm:$0xff]  ;;  %v219_v7 = vld.sshfl [vmem:[#allocation1 + $0x28] sm:$0xff pattern:$0x73625140]  ;;  %v1217_v12 = vld [vmem:[#allocation7 + $0x28] sm:$0xff] }
  0x28   :  { %620 = vmatpush.bf16.msra.mxu0 %v1149_v25  ;;  %v1204_v5 = vld [vmem:[#allocation5 + $0x1c0] sm:$0xff]  ;;  %v220_v8 = vld.sshfl [vmem:[#allocation1 + $0x30] sm:$0xff pattern:$0x73625140]  ;;  %v1218_v11 = vld [vmem:[#allocation7 + $0x30] sm:$0xff] }
  0x29   :  { %633 = vmatpush.bf16.msra.mxu1 %v1157_v26  ;;  %v221_v9 = vld.sshfl [vmem:[#allocation1 + $0x38] sm:$0xff pattern:$0x73625140]  ;;  %v1227_v13 = vld [vmem:[%s1424_s2] ss:$0 sm:$0xff]  ;;  %v1215_v18 = vld [vmem:[#allocation7 + $0x18] sm:$0xff] }
  0x2a   :  { %646 = vmatpush.bf16.msra.mxu2 %v1165_v27  ;;  %77 = vst [vmem:[#allocation8] sm:$0xf] %v1227_v13  ;;  %v1216_v16 = vld [vmem:[#allocation7 + $0x20] sm:$0xff]  ;;  %v1214_v22 = vld [vmem:[#allocation7 + $0x10] sm:$0xff]  ;;  %v1213_v23 = vld [vmem:[#allocation7 + $0x8] sm:$0xff] }
  0x2b   :  { %659 = vmatpush.bf16.msra.mxu3 %v1173_v28  ;;  %v1212_v26 = vld [vmem:[#allocation7] sm:$0xff] }
  0x2c   :  { %621 = vmatpush.bf16.msra.mxu0 %v1148_v30 }
  0x2d   :  { %634 = vmatpush.bf16.msra.mxu1 %v1156_v31 }
  0x2e   :  { %647 = vmatpush.bf16.msra.mxu2 %v1164_v32 }
  0x2f   :  { %660 = vmatpush.bf16.msra.mxu3 %v1172_v33  ;;  %622 = vmatmul.bf16.vlgmr.msra.gmra.mxu0 %v214_v41 }
  0x30   :  { %666 = vmatpush.bf16.msrb.mxu0 %v1187_v34  ;;  %635 = vmatmul.bf16.vlgmr.msra.gmra.mxu1 %v215_v43 }
  0x31   :  { %679 = vmatpush.bf16.msrb.mxu1 %v1195_v35  ;;  %648 = vmatmul.bf16.vlgmr.msra.gmra.mxu2 %v216_v40 }
  0x32   :  { %692 = vmatpush.bf16.msrb.mxu2 %v1203_v36  ;;  %661 = vmatmul.bf16.vlgmr.msra.gmra.mxu3 %v217_v42 }
  0x33   :  { %705 = vmatpush.bf16.msrb.mxu3 %v1211_v37 }
  0x34   :  { %667 = vmatpush.bf16.msrb.mxu0 %v1186_v38 }
  0x35   :  { %680 = vmatpush.bf16.msrb.mxu1 %v1194_v39  ;;  %v78_v39 = vld [vmem:[#allocation8] sm:$0xf] }
  0x36   :  { %693 = vmatpush.bf16.msrb.mxu2 %v1202_v44 }
  0x37   :  { %706 = vmatpush.bf16.msrb.mxu3 %v1210_v45 }
  0x38   :  { %668 = vmatpush.bf16.msrb.mxu0 %v1185_v46 }
  0x39   :  { %681 = vmatpush.bf16.msrb.mxu1 %v1193_v47  ;;  %v1228_v47 = vld [vmem:[%s1426_s4] ss:$0 sm:$0xff]  ;;  %s1365_s4 = smov [#allocation9]  }
  0x3a   :  { %694 = vmatpush.bf16.msrb.mxu2 %v1201_v48  ;;  %s842_s19 = sshll.u32 %s1365_s4, 4  ;;  %s843_s19 = int_to_ptr.vmem [resolvable:$true] %s842_s19 }
  0x3b   :  { %707 = vmatpush.bf16.msrb.mxu3 %v1209_v49 }
  0x3c   :  { %669 = vmatpush.bf16.msrb.mxu0 %v1184_v50 }
  0x3d   :  { %682 = vmatpush.bf16.msrb.mxu1 %v1192_v51 }
  0x3e   :  { %695 = vmatpush.bf16.msrb.mxu2 %v1200_v52 }
  0x3f   :  { %708 = vmatpush.bf16.msrb.mxu3 %v1208_v53 }
  0x40   :  { %670 = vmatpush.bf16.msrb.mxu0 %v1183_v54 }
  0x41   :  { %683 = vmatpush.bf16.msrb.mxu1 %v1191_v55 }
  0x42   :  { %696 = vmatpush.bf16.msrb.mxu2 %v1199_v56 }
  0x43   :  { %709 = vmatpush.bf16.msrb.mxu3 %v1207_v57 }
  0x44   :  { %671 = vmatpush.bf16.msrb.mxu0 %v1182_v58 }
  0x45   :  { %684 = vmatpush.bf16.msrb.mxu1 %v1190_v59 }
  0x46   :  { %697 = vmatpush.bf16.msrb.mxu2 %v1198_v60 }
  0x47   :  { %710 = vmatpush.bf16.msrb.mxu3 %v1206_v61 }
  0x48   :  { %672 = vmatpush.bf16.msrb.mxu0 %v1181_v62 }
  0x49   :  { %685 = vmatpush.bf16.msrb.mxu1 %v1189_v63 }
  0x4a   :  { %698 = vmatpush.bf16.msrb.mxu2 %v1197_v0 }
  0x4b   :  { %711 = vmatpush.bf16.msrb.mxu3 %v1205_v1 }
  0x4c   :  { %673 = vmatpush.bf16.msrb.mxu0 %v1180_v2 }
  0x4d   :  { %686 = vmatpush.bf16.msrb.mxu1 %v1188_v3 }
  0x4e   :  { %699 = vmatpush.bf16.msrb.mxu2 %v1196_v4 }
  0x4f   :  { %712 = vmatpush.bf16.msrb.mxu3 %v1204_v5  ;;  %674 = vmatmul.bf16.vlgmr.msrb.gmra.mxu0 %v218_v6 }
  0x50   :  { %687 = vmatmul.bf16.vlgmr.msrb.gmra.mxu1 %v219_v7  ;;  %795 = vmatpush.bf16.msra.mxu0 %v1219_v10 }
  0x51   :  { %700 = vmatmul.bf16.vlgmr.msrb.gmra.mxu2 %v220_v8 }
  0x52   :  { %713 = vmatmul.bf16.vlgmr.msrb.gmra.mxu3 %v221_v9 }
  0x54   :  { %796 = vmatpush.bf16.msra.mxu0 %v1218_v11 }
  0x58   :  { %797 = vmatpush.bf16.msra.mxu0 %v1217_v12 }
  0x5c   :  { %798 = vmatpush.bf16.msra.mxu0 %v1216_v16 }
  0x60   :  { %799 = vmatpush.bf16.msra.mxu0 %v1215_v18 }
  0x64   :  { %800 = vmatpush.bf16.msra.mxu0 %v1214_v22 }
  0x68   :  { %801 = vmatpush.bf16.msra.mxu0 %v1213_v23 }
  0x6c   :  { %802 = vmatpush.bf16.msra.mxu0 %v1212_v26 }
  0xac   :  { %v623_v14 = vpop.f32.mrf.mxu0 }
  0xad   :  { %v636_v15 = vpop.f32.mrf.mxu1 }
  0xae   :  { %v637_v27 = vadd.f32 %v636_v15, %v623_v14 }
  0xb4   :  { %v649_v17 = vpop.f32.mrf.mxu2  ;;  %v625_v20 = vpop.f32.mrf.mxu0 }
  0xb5   :  { %v662_v19 = vpop.f32.mrf.mxu3  ;;  %v638_v21 = vpop.f32.mrf.mxu1  ;;  %v650_v28 = vadd.f32 %v649_v17, %v637_v27 }
  0xb7   :  { %v663_v29 = vadd.f32 %v662_v19, %v650_v28 }
  0xbc   :  { %v651_v24 = vpop.f32.mrf.mxu2 }
  0xbd   :  { %v664_v25 = vpop.f32.mrf.mxu3 }
  0xcc   :  { %v675_v30 = vpop.f32.mrf.mxu0 }
  0xcd   :  { %v688_v31 = vpop.f32.mrf.mxu1  ;;  %v676_v32 = vadd.f32 %v675_v30, %v663_v29 }
  0xcf   :  { %v689_v33 = vadd.f32 %v688_v31, %v676_v32 }
  0xd4   :  { %v701_v34 = vpop.f32.mrf.mxu2  ;;  %v677_v37 = vpop.f32.mrf.mxu0 }
  0xd5   :  { %v714_v35 = vpop.f32.mrf.mxu3  ;;  %v702_v36 = vadd.f32 %v701_v34, %v689_v33  ;;  %v690_v38 = vpop.f32.mrf.mxu1 }
  0xd7   :  { %v715_v40 = vadd.f32 %v714_v35, %v702_v36 }
  0xd9   :  { %v718_v41 = vadd.f32 %v715_v40, %v78_v39 }
  0xdb   :  { %719 = vst [vmem:[#allocation8] sm:$0xf] %v718_v41 }
  0xdc   :  { %v703_v42 = vpop.f32.mrf.mxu2 }
  0xdd   :  { %v716_v43 = vpop.f32.mrf.mxu3 }
  0xe2   :  { %v723_v44 = vld [vmem:[#allocation8] sm:$0xf] }
  0xe3   :  { %v724_v45 = vmax.f32 %v723_v44, 0.0 }
  0xe5   :  { %v726_v46 = vpack.c.bf16 %v724_v45, %v724_v45  ;;  %725 = vst [vmem:[#allocation8] sm:$0xf] %v724_v45 }
  0xe6   :  { %836 = dma.vmem_to_hbm [thread:$0]  %s832_s18, 64, %s834_s16, [#allocation4]  }
  0xe7   :  { %803 = vmatmul.bf16.vlgmr.msra.gmra.mxu0 %v726_v46 }
 0x164   :  { %v804_v48 = vpop.f32.mrf.mxu0 }
 0x165   :  { %v805_v49 = vadd.f32 %v1228_v47, %v804_v48 }
 0x167   :  { %v808_v50 = vmul.f32 %v805_v49, %v805_v49 }
 0x169   :  { %v810_v51 = vsel %vm809_vm0, %v808_v50, 0.0 }
 0x16a   :  { %811 = vadd.xlane.f32.xlu0 %v810_v51 }
 0x16c   :  { %v806_v52 = vpop.f32.mrf.mxu0 }
 0x1dd   :  { %v812_v53 = vpop.xlane.xlu0 %811 }
 0x1de   :  { %v813_v54 = vmax.f32 %v812_v53, 1e-24 }
 0x1e0   :  { %1229 = vrsqrt.f32 %v813_v54  ;;  %vm820_vm2 = vweird.f32 %v813_v54 }
 0x1e6   :  { %v1230_v55 = vpop.eup %1229 }
 0x1e7   :  { %v815_v56 = vmul.f32 %v1230_v55, %v813_v54  ;;  %vm821_vm1 = vweird.f32 %v1230_v55 }
 0x1e8   :  { %vm822_vm3 = vmor %vm820_vm2, %vm821_vm1 }
 0x1e9   :  { %v816_v57 = vmul.f32 %v1230_v55, %v815_v56 }
 0x1eb   :  { %v817_v58 = vmul.f32 0.5, %v816_v57 }
 0x1ed   :  { %v818_v59 = vsub.f32 1.5, %v817_v58 }
 0x1ef   :  { %v819_v60 = vmul.f32 %v1230_v55, %v818_v59 }
 0x1f1   :  { %v823_v61 = vsel %vm822_vm3, %v1230_v55, %v819_v60 }
 0x1f2   :  { %v824_v62 = vmul.f32 %v823_v61, %v805_v49 }
 0x1f4   :  { %825 = vst [vmem:[#allocation9] sm:$0xf] %v824_v62 }
 0x1f5   :  { %847 = dma.vmem_to_hbm [thread:$0]  %s843_s19, 64, %s845_s21, [#allocation10]  }
 0x1f6   :  { %1355 = dma.done.wait [#allocation4], 64  }
 0x1f7   :  { %1356 = vsyncadd [#allocation4], 4294967232 }
 0x1f8   :  { %1357 = dma.done.wait [#allocation10], 64  }
 0x1f9   :  { %1358 = vsyncadd [#allocation10], 4294967232 }
 0x1fa   :  { %856 = vsyncpa [#allocation3], 1 }
 0x1fb   :  { %857 = vsyncpa [#allocation6], 1 }
 0x1fc   :  { %858 = vsyncpa [#allocation4], 1 }
 0x1fd   :  { %859 = vsyncpa [#allocation10], 1 }

</bundles_post_ra>
